<compile_context>
chip_gen: v5e
topology: v5e:2x2
jax: 0.10.0
libtpu: 0.0.40
codegen_flags: <defaults>
</compile_context>

<pallas_src>
import jax
import jax.numpy as jnp
from jax.experimental import pallas as pl
from jax.experimental.pallas import tpu as pltpu


def _round_up(n, m):
    return ((n + m - 1) // m) * m


def _leaky_relu(h, slope=0.2):
    return jnp.where(h > 0, h, slope * h)


def encoder_kernel(x_ref, w1_ref, b1_ref, w2_ref, b2_ref, w3_ref, b3_ref, o_ref):
    cdt = w1_ref.dtype  # MXU input dtype (bf16 or f32); set by the weights' dtype.
    # In-kernel cast of x (VPU, hidden under the matmul); x stays f32 in HBM.
    x = x_ref[...].astype(cdt)
    # layer_in: (TB, in) @ (in, 264) + (1, 264) -> LeakyReLU(0.2)
    h = jnp.dot(x, w1_ref[...], preferred_element_type=jnp.float32) + b1_ref[...]
    h = _leaky_relu(h)
    # hidden[0]: (TB, 264) @ (264, 64) + (1, 64) -> LeakyReLU(0.2)
    h = jnp.dot(h.astype(cdt), w2_ref[...], preferred_element_type=jnp.float32) + b2_ref[...]
    h = _leaky_relu(h)
    # layer_out: (TB, 64) @ (64, latent) + (1, latent) -> Tanh
    h = jnp.dot(h.astype(cdt), w3_ref[...], preferred_element_type=jnp.float32) + b3_ref[...]
    o_ref[...] = jnp.tanh(h).astype(o_ref.dtype)


def _choose_tile(batch, block_b, align=16):
    """Batch tile: <= block_b, 16-row aligned, and small enough that moderate
    batches still give >= 2 grid steps (both TensorCores busy on v7x)."""
    half = _round_up(pl.cdiv(batch, 2), align)
    tb = min(_round_up(block_b, align), max(align, half))
    tb = min(tb, _round_up(batch, 8))   # never (much) larger than the batch itself
    return max(8, tb)


def encoder_forward(x, params, *, block_b=4096):
    """x: (B, input_dim) float32.  params: dict with pre-transposed weights
    (w1,w2,w3 already in the desired MXU compute dtype) and 2-D f32 biases."""
    w1, b1, w2, b2, w3, b3 = (params["w1"], params["b1"], params["w2"],
                              params["b2"], params["w3"], params["b3"])
    B, input_dim = x.shape
    hidden1_dim = w1.shape[1]
    hidden2_dim = w2.shape[1]
    latent_dim = w3.shape[1]

    tb = _choose_tile(B, block_b)
    grid = (pl.cdiv(B, tb),)  # ragged: last block is partial (padded load / masked store)

    resident = lambda shape: pl.BlockSpec(shape, lambda i: (0, 0))

    weight_bytes = sum(int(a.size) * a.dtype.itemsize for a in (w1, b1, w2, b2, w3, b3))
    cost = pl.CostEstimate(
        flops=2 * B * (input_dim * hidden1_dim
                       + hidden1_dim * hidden2_dim
                       + hidden2_dim * latent_dim),
        transcendentals=B * latent_dim,
        bytes_accessed=int(x.size) * x.dtype.itemsize
                       + B * latent_dim * 4
                       + weight_bytes,
    )

    return pl.pallas_call(
        encoder_kernel,
        out_shape=jax.ShapeDtypeStruct((B, latent_dim), jnp.float32),
        grid=grid,
        in_specs=[
            pl.BlockSpec((tb, input_dim), lambda i: (i, 0)),   # x: tiled over batch
            resident(w1.shape), resident(b1.shape),            # weights/biases: resident
            resident(w2.shape), resident(b2.shape),
            resident(w3.shape), resident(b3.shape),
        ],
        out_specs=pl.BlockSpec((tb, latent_dim), lambda i: (i, 0)),
        compiler_params=pltpu.CompilerParams(
            dimension_semantics=("parallel",),                 # megacore split on v7x
        ),
        cost_estimate=cost,
    )(x, w1, b1, w2, b2, w3, b3)


def cast_encoder_weights(params, compute_dtype):
    """Cast the (tiny) weight matrices once, outside the per-call path.
    Biases stay f32 so the bias-add / activation epilogue is exact in f32."""
    out = dict(params)
    for k in ("w1", "w2", "w3"):
        out[k] = params[k].astype(compute_dtype)
    return out


def init_encoder_params(key, input_dim, latent_dim):
    """Deterministic init mimicking nn.Linear default: U(-1/sqrt(fan_in), 1/sqrt(fan_in)).
    Weights stored as (in_features, out_features) (transposed vs. PyTorch)."""
    hidden1_dim, hidden_out_dim = 264, 64
    dims = [(input_dim, hidden1_dim), (hidden1_dim, hidden_out_dim),
            (hidden_out_dim, latent_dim)]
    params = {}
    keys = jax.random.split(key, 2 * len(dims))
    for i, (fan_in, fan_out) in enumerate(dims):
        bound = 1.0 / (fan_in ** 0.5)
        w = jax.random.uniform(keys[2 * i], (fan_in, fan_out),
                               minval=-bound, maxval=bound, dtype=jnp.float32)
        b = jax.random.uniform(keys[2 * i + 1], (1, fan_out),
                               minval=-bound, maxval=bound, dtype=jnp.float32)
        params[f"w{i + 1}"] = w
        params[f"b{i + 1}"] = b
    return params


def encoder_reference(x, params):
    """Pure-JAX reference with the same dtype recipe as the kernel
    (MXU inputs in params' weight dtype, f32 accumulation, f32 epilogue)."""
    cdt = params["w1"].dtype
    h = jnp.dot(x.astype(cdt), params["w1"],
                preferred_element_type=jnp.float32) + params["b1"]
    h = jnp.where(h > 0, h, 0.2 * h)
    h = jnp.dot(h.astype(cdt), params["w2"],
                preferred_element_type=jnp.float32) + params["b2"]
    h = jnp.where(h > 0, h, 0.2 * h)
    h = jnp.dot(h.astype(cdt), params["w3"],
                preferred_element_type=jnp.float32) + params["b3"]
    return jnp.tanh(h)


if __name__ == "__main__":
    key = jax.random.PRNGKey(0)
    k_x, k_x2, k_p = jax.random.split(key, 3)

    input_dim, latent_dim = 32, 8
    params_f32 = init_encoder_params(k_p, input_dim, latent_dim)

    # --- Test 1: small batch, f32 weights (exact check, single full block) ---
    B = 8
    x = jax.random.normal(k_x, (B, input_dim), dtype=jnp.float32)
    out = encoder_forward(x, params_f32)
    out = jax.block_until_ready(out)
    ref = encoder_reference(x, params_f32)
    assert out.shape == (B, latent_dim)
    assert jnp.allclose(out, ref, atol=1e-5, rtol=1e-5), "f32 mismatch vs reference"

    # --- Test 2: ragged batch, bf16 weights, multi-step grid with a partial
    #             boundary block (no wrapper pad/slice) ---
    B2 = 300
    x2 = jax.random.normal(k_x2, (B2, input_dim), dtype=jnp.float32)
    params_bf16 = cast_encoder_weights(params_f32, jnp.bfloat16)
    out2 = encoder_forward(x2, params_bf16, block_b=128)
    out2 = jax.block_until_ready(out2)
    ref2 = encoder_reference(x2, params_bf16)
    assert out2.shape == (B2, latent_dim)
    assert jnp.all(jnp.isfinite(out2)), "non-finite values in kernel output"
    assert jnp.allclose(out2, ref2, atol=2e-2, rtol=2e-2), "bf16 mismatch vs reference"

    # --- Test 3: larger batch exercising the default (big) tile path ---
    B3 = 5000
    x3 = jax.random.normal(k_x, (B3, input_dim), dtype=jnp.float32)
    out3 = jax.block_until_ready(encoder_forward(x3, params_bf16))
    ref3 = encoder_reference(x3, params_bf16)
    assert out3.shape == (B3, latent_dim)
    assert jnp.allclose(out3, ref3, atol=2e-2, rtol=2e-2), "large-batch mismatch"

    print("KERNEL_OK")
</pallas_src>

<mosaic_0001>
module attributes {stable_mosaic.version = 11 : i64} {
  func.func @encoder_kernel(%arg0: i32, %arg1: memref<8x32xf32, #tpu.memory_space<vmem>>, %arg2: memref<32x264xf32, #tpu.memory_space<vmem>>, %arg3: memref<1x264xf32, #tpu.memory_space<vmem>>, %arg4: memref<264x64xf32, #tpu.memory_space<vmem>>, %arg5: memref<1x64xf32, #tpu.memory_space<vmem>>, %arg6: memref<64x8xf32, #tpu.memory_space<vmem>>, %arg7: memref<1x8xf32, #tpu.memory_space<vmem>>, %arg8: memref<8x8xf32, #tpu.memory_space<vmem>>) attributes {dimension_semantics = [#tpu.dimension_semantics<parallel>], iteration_bounds = array<i64: 1>, scalar_prefetch = 0 : i64, scratch_operands = 0 : i64, tpu.core_type = #tpu.core_type<tc>, window_params = [{transform_indices = @transform_0, window_bounds = array<i64: 8, 32>}, {pipeline_mode = #tpu.pipeline_mode<synchronous>, transform_indices = @transform_1, window_bounds = array<i64: 32, 264>}, {pipeline_mode = #tpu.pipeline_mode<synchronous>, transform_indices = @transform_2, window_bounds = array<i64: 1, 264>}, {pipeline_mode = #tpu.pipeline_mode<synchronous>, transform_indices = @transform_3, window_bounds = array<i64: 264, 64>}, {pipeline_mode = #tpu.pipeline_mode<synchronous>, transform_indices = @transform_4, window_bounds = array<i64: 1, 64>}, {pipeline_mode = #tpu.pipeline_mode<synchronous>, transform_indices = @transform_5, window_bounds = array<i64: 64, 8>}, {pipeline_mode = #tpu.pipeline_mode<synchronous>, transform_indices = @transform_6, window_bounds = array<i64: 1, 8>}, {transform_indices = @transform_7, window_bounds = array<i64: 8, 8>}]} {
    %c0 = arith.constant 0 : index
    %c0_0 = arith.constant 0 : index
    %0 = vector.load %arg1[%c0, %c0_0] : memref<8x32xf32, #tpu.memory_space<vmem>>, vector<8x32xf32>
    %c0_1 = arith.constant 0 : index
    %c0_2 = arith.constant 0 : index
    %1 = vector.load %arg2[%c0_1, %c0_2] : memref<32x264xf32, #tpu.memory_space<vmem>>, vector<32x264xf32>
    %cst = arith.constant dense<0.000000e+00> : vector<8x264xf32>
    %2 = tpu.matmul %0, %1, %cst {dimension_numbers = #tpu.dot_dimension_numbers<[1], [0], [0], [1], [0, 0, 1, 1], [], []>} : vector<8x32xf32>, vector<32x264xf32>, vector<8x264xf32> -> vector<8x264xf32>
    %c0_3 = arith.constant 0 : index
    %c0_4 = arith.constant 0 : index
    %3 = vector.load %arg3[%c0_3, %c0_4] : memref<1x264xf32, #tpu.memory_space<vmem>>, vector<1x264xf32>
    %4 = vector.broadcast %3 : vector<1x264xf32> to vector<8x264xf32>
    %5 = arith.addf %2, %4 : vector<8x264xf32>
    %cst_5 = arith.constant 0.000000e+00 : f32
    %6 = vector.broadcast %cst_5 : f32 to vector<8x264xf32>
    %7 = arith.cmpf ogt, %5, %6 : vector<8x264xf32>
    %cst_6 = arith.constant 2.000000e-01 : f32
    %8 = vector.broadcast %cst_6 : f32 to vector<8x264xf32>
    %9 = arith.mulf %8, %5 : vector<8x264xf32>
    %10 = arith.select %7, %5, %9 : vector<8x264xi1>, vector<8x264xf32>
    %c0_7 = arith.constant 0 : index
    %c0_8 = arith.constant 0 : index
    %11 = vector.load %arg4[%c0_7, %c0_8] : memref<264x64xf32, #tpu.memory_space<vmem>>, vector<264x64xf32>
    %cst_9 = arith.constant dense<0.000000e+00> : vector<8x64xf32>
    %12 = tpu.matmul %10, %11, %cst_9 {dimension_numbers = #tpu.dot_dimension_numbers<[1], [0], [0], [1], [0, 0, 1, 1], [], []>} : vector<8x264xf32>, vector<264x64xf32>, vector<8x64xf32> -> vector<8x64xf32>
    %c0_10 = arith.constant 0 : index
    %c0_11 = arith.constant 0 : index
    %13 = vector.load %arg5[%c0_10, %c0_11] : memref<1x64xf32, #tpu.memory_space<vmem>>, vector<1x64xf32>
    %14 = vector.broadcast %13 : vector<1x64xf32> to vector<8x64xf32>
    %15 = arith.addf %12, %14 : vector<8x64xf32>
    %cst_12 = arith.constant 0.000000e+00 : f32
    %16 = vector.broadcast %cst_12 : f32 to vector<8x64xf32>
    %17 = arith.cmpf ogt, %15, %16 : vector<8x64xf32>
    %cst_13 = arith.constant 2.000000e-01 : f32
    %18 = vector.broadcast %cst_13 : f32 to vector<8x64xf32>
    %19 = arith.mulf %18, %15 : vector<8x64xf32>
    %20 = arith.select %17, %15, %19 : vector<8x64xi1>, vector<8x64xf32>
    %c0_14 = arith.constant 0 : index
    %c0_15 = arith.constant 0 : index
    %21 = vector.load %arg6[%c0_14, %c0_15] : memref<64x8xf32, #tpu.memory_space<vmem>>, vector<64x8xf32>
    %cst_16 = arith.constant dense<0.000000e+00> : vector<8x8xf32>
    %22 = tpu.matmul %20, %21, %cst_16 {dimension_numbers = #tpu.dot_dimension_numbers<[1], [0], [0], [1], [0, 0, 1, 1], [], []>} : vector<8x64xf32>, vector<64x8xf32>, vector<8x8xf32> -> vector<8x8xf32>
    %c0_17 = arith.constant 0 : index
    %c0_18 = arith.constant 0 : index
    %23 = vector.load %arg7[%c0_17, %c0_18] : memref<1x8xf32, #tpu.memory_space<vmem>>, vector<1x8xf32>
    %24 = vector.broadcast %23 : vector<1x8xf32> to vector<8x8xf32>
    %25 = arith.addf %22, %24 : vector<8x8xf32>
    %26 = math.tanh %25 : vector<8x8xf32>
    %c0_19 = arith.constant 0 : index
    %c0_20 = arith.constant 0 : index
    %27 = vector.load %arg8[%c0_19, %c0_20] : memref<8x8xf32, #tpu.memory_space<vmem>>, vector<8x8xf32>
    tpu.vector_store %arg8[%c0_19, %c0_20], %26 {strides = array<i32>} : memref<8x8xf32, #tpu.memory_space<vmem>>, vector<8x8xf32>,
    return
  }
  func.func @transform_0(%arg0: i32) -> (i32, i32) {
    %c0_i32 = arith.constant 0 : i32
    %c0_i32_0 = arith.constant 0 : i32
    return %arg0, %c0_i32 : i32, i32
  }
  func.func @transform_1(%arg0: i32) -> (i32, i32) {
    %c0_i32 = arith.constant 0 : i32
    %c0_i32_0 = arith.constant 0 : i32
    %c0_i32_1 = arith.constant 0 : i32
    return %c0_i32, %c0_i32_0 : i32, i32
  }
  func.func @transform_2(%arg0: i32) -> (i32, i32) {
    %c0_i32 = arith.constant 0 : i32
    %c0_i32_0 = arith.constant 0 : i32
    %c0_i32_1 = arith.constant 0 : i32
    return %c0_i32, %c0_i32_0 : i32, i32
  }
  func.func @transform_3(%arg0: i32) -> (i32, i32) {
    %c0_i32 = arith.constant 0 : i32
    %c0_i32_0 = arith.constant 0 : i32
    %c0_i32_1 = arith.constant 0 : i32
    return %c0_i32, %c0_i32_0 : i32, i32
  }
  func.func @transform_4(%arg0: i32) -> (i32, i32) {
    %c0_i32 = arith.constant 0 : i32
    %c0_i32_0 = arith.constant 0 : i32
    %c0_i32_1 = arith.constant 0 : i32
    return %c0_i32, %c0_i32_0 : i32, i32
  }
  func.func @transform_5(%arg0: i32) -> (i32, i32) {
    %c0_i32 = arith.constant 0 : i32
    %c0_i32_0 = arith.constant 0 : i32
    %c0_i32_1 = arith.constant 0 : i32
    return %c0_i32, %c0_i32_0 : i32, i32
  }
  func.func @transform_6(%arg0: i32) -> (i32, i32) {
    %c0_i32 = arith.constant 0 : i32
    %c0_i32_0 = arith.constant 0 : i32
    %c0_i32_1 = arith.constant 0 : i32
    return %c0_i32, %c0_i32_0 : i32, i32
  }
  func.func @transform_7(%arg0: i32) -> (i32, i32) {
    %c0_i32 = arith.constant 0 : i32
    %c0_i32_0 = arith.constant 0 : i32
    return %arg0, %c0_i32 : i32, i32
  }
}

</mosaic_0001>

<bundles_post_ra>
// kernel: tpu_custom_call.1
= control target key start
LH: loop header
LB: loop body
LE: loop exit
PB: predicated region body
PF: predicated region fallthrough
CT: control target
= control target key end

     0   :  { %vm48_vm0 = vcmask 261120   ;;  %s535_s0 = inlined_call_operand.vmem [shape: f32[8,32], index: 0, kind: input, shape index: {}]   ;;  %s536_s1 = inlined_call_operand.vmem [shape: f32[32,264], index: 1, kind: input, shape index: {}]   ;;  %s537_s2 = inlined_call_operand.vmem [shape: f32[1,264], index: 2, kind: input, shape index: {}]   ;;  %s538_s3 = inlined_call_operand.vmem [shape: f32[264,64], index: 3, kind: input, shape index: {}]   ;;  %s539_s4 = inlined_call_operand.vmem [shape: f32[1,64], index: 4, kind: input, shape index: {}]   ;;  %s540_s5 = inlined_call_operand.vmem [shape: f32[64,8], index: 5, kind: input, shape index: {}]   ;;  %s541_s6 = inlined_call_operand.vmem [shape: f32[1,8], index: 6, kind: input, shape index: {}]   ;;  %s542_s7 = inlined_call_operand.hbm [shape: f32[8,8], index: 7, kind: output, shape index: {}]  }
   0x1   :  { %v37_v0 = vld [vmem:[%s536_s1 + $0x48] sm:$0xff]  ;;  %v34_v1 = vld [vmem:[%s536_s1 + $0x30] sm:$0xff]  ;;  %v39_v2 = vld [vmem:[%s536_s1 + $0x58] sm:$0xff] }
   0x2   :  { %64 = vmatpush.msra.mxu1 %v37_v0  ;;  %104 = vmatpush.msra.mxu2 %v39_v2  ;;  %v36_v3 = vld [vmem:[%s536_s1 + $0x40] sm:$0xff]  ;;  %v31_v4 = vld [vmem:[%s536_s1 + $0x18] sm:$0xff]  ;;  %v33_v5 = vld [vmem:[%s536_s1 + $0x28] sm:$0xff] }
   0x3   :  { %v28_v6 = vld [vmem:[%s536_s1] sm:$0xff]  ;;  %v30_v7 = vld [vmem:[%s536_s1 + $0x10] sm:$0xff]  ;;  %v136_v8 = vld [vmem:[%s538_s3 + $0x78] sm:$0xff] }
   0x4   :  { %65 = vmatpush.msra.mxu1 %v34_v1  ;;  %105 = vmatpush.msra.mxu2 %v36_v3  ;;  %v27_v9 = vld [vmem:[%s535_s0] sm:$0xff]  ;;  %v38_v10 = vld [vmem:[%s536_s1 + $0x50] sm:$0xff]  ;;  %v152_v12 = vld [vmem:[%s538_s3 + $0xf8] sm:$0xff] }
   0x5   :  { %162 = vmatpush.msra.mxu3 %v136_v8  ;;  %v135_v11 = vld [vmem:[%s538_s3 + $0x70] sm:$0xff]  ;;  %v35_v13 = vld [vmem:[%s536_s1 + $0x38] sm:$0xff]  ;;  %v134_v14 = vld [vmem:[%s538_s3 + $0x68] sm:$0xff]  ;;  %182 = vmatpush.msra.mxu0 %v152_v12 }
   0x6   :  { %66 = vmatpush.msra.mxu1 %v31_v4  ;;  %106 = vmatpush.msra.mxu2 %v33_v5  ;;  %v151_v15 = vld [vmem:[%s538_s3 + $0xf0] sm:$0xff]  ;;  %v32_v16 = vld [vmem:[%s536_s1 + $0x20] sm:$0xff]  ;;  %v29_v18 = vld [vmem:[%s536_s1 + $0x8] sm:$0xff] }
   0x7   :  { %163 = vmatpush.msra.mxu3 %v135_v11  ;;  %v133_v17 = vld [vmem:[%s538_s3 + $0x60] sm:$0xff]  ;;  %v150_v19 = vld [vmem:[%s538_s3 + $0xe8] sm:$0xff]  ;;  %v132_v20 = vld [vmem:[%s538_s3 + $0x58] sm:$0xff]  ;;  %183 = vmatpush.msra.mxu0 %v151_v15 }
   0x8   :  { %67 = vmatpush.msra.mxu1 %v28_v6  ;;  %107 = vmatpush.msra.mxu2 %v30_v7  ;;  %v149_v21 = vld [vmem:[%s538_s3 + $0xe0] sm:$0xff] }
   0x9   :  { %279 = vmatmul.msk.f32.vlgmr.msra.gmra.mxu1 %vm48_vm0, %v27_v9  ;;  %281 = vmatmul.msk.f32.vlgmr.msra.gmra.mxu2 %vm48_vm0, %v27_v9 }
   0xa   :  { %84 = vmatpush.msrb.mxu1 %v38_v10  ;;  %164 = vmatpush.msra.mxu3 %v134_v14 }
   0xc   :  { %85 = vmatpush.msrb.mxu1 %v35_v13  ;;  %165 = vmatpush.msra.mxu3 %v133_v17 }
   0xe   :  { %86 = vmatpush.msrb.mxu1 %v32_v16 }
   0xf   :  { %12 = vsyncpa [#allocation3], 0  ;;  %v131_v22 = vld [vmem:[%s538_s3 + $0x50] sm:$0xff]  ;;  %184 = vmatpush.msra.mxu0 %v150_v19  ;;  %166 = vmatpush.msra.mxu3 %v132_v20  ;;  %v148_v23 = vld [vmem:[%s538_s3 + $0xd8] sm:$0xff]  ;;  %vm158_vm3 = vcmask 64512   ;;  %vm237_vm6 = vcmask 523264  }
  0x10   :  { %87 = vmatpush.msrb.mxu1 %v29_v18  ;;  %v130_v24 = vld [vmem:[%s538_s3 + $0x48] sm:$0xff]  ;;  %v147_v25 = vld [vmem:[%s538_s3 + $0xd0] sm:$0xff]  ;;  %v129_v26 = vld [vmem:[%s538_s3 + $0x40] sm:$0xff]  ;;  %s270_s16 = sshll.u32 %s542_s7, 4  ;;  %s271_s16 = int_to_ptr.hbm [resolvable:$true] %s270_s16 }
  0x11   :  { %280 = vmatmul.msk.f32.vlgmr.msrb.gmra.mxu1 %vm48_vm0, %v27_v9  ;;  %185 = vmatpush.msra.mxu0 %v149_v21  ;;  %v146_v27 = vld [vmem:[%s538_s3 + $0xc8] sm:$0xff]  ;;  %v128_v28 = vld [vmem:[%s538_s3 + $0x38] sm:$0xff]  ;;  %v145_v29 = vld [vmem:[%s538_s3 + $0xc0] sm:$0xff] }
  0x12   :  { %167 = vmatpush.msra.mxu3 %v131_v22  ;;  %v127_v30 = vld [vmem:[%s538_s3 + $0x30] sm:$0xff]  ;;  %v144_v31 = vld [vmem:[%s538_s3 + $0xb8] sm:$0xff]  ;;  %v126_v32 = vld [vmem:[%s538_s3 + $0x28] sm:$0xff] }
  0x13   :  { %186 = vmatpush.msra.mxu0 %v148_v23  ;;  %v125_v33 = vld [vmem:[%s538_s3 + $0x20] sm:$0xff]  ;;  %v124_v34 = vld [vmem:[%s538_s3 + $0x18] sm:$0xff]  ;;  %v123_v35 = vld [vmem:[%s538_s3 + $0x10] sm:$0xff] }
  0x14   :  { %168 = vmatpush.msra.mxu3 %v130_v24  ;;  %v143_v36 = vld [vmem:[%s538_s3 + $0xb0] sm:$0xff]  ;;  %v122_v37 = vld [vmem:[%s538_s3 + $0x8] sm:$0xff]  ;;  %v121_v39 = vld [vmem:[%s538_s3] sm:$0xff] }
  0x15   :  { %187 = vmatpush.msra.mxu0 %v147_v25  ;;  %v142_v38 = vld [vmem:[%s538_s3 + $0xa8] sm:$0xff]  ;;  %v141_v40 = vld [vmem:[%s538_s3 + $0xa0] sm:$0xff]  ;;  %v140_v41 = vld [vmem:[%s538_s3 + $0x98] sm:$0xff] }
  0x16   :  { %169 = vmatpush.msra.mxu3 %v129_v26  ;;  %v139_v42 = vld [vmem:[%s538_s3 + $0x90] sm:$0xff]  ;;  %v138_v43 = vld [vmem:[%s538_s3 + $0x88] sm:$0xff]  ;;  %v153_v44 = vld [vmem:[%s538_s3 + $0x100] sm:$0xff] }
  0x17   :  { %188 = vmatpush.msra.mxu0 %v146_v27  ;;  %v137_v45 = vld [vmem:[%s538_s3 + $0x80] sm:$0xff]  ;;  %217 = vmatpush.msra.mxu1 %v153_v44  ;;  %v232_v46 = vld [vmem:[%s540_s5 + $0x38] sm:$0xff]  ;;  %v231_v47 = vld [vmem:[%s540_s5 + $0x30] sm:$0xff] }
  0x18   :  { %170 = vmatpush.msra.mxu3 %v128_v28  ;;  %249 = vmatpush.msrb.mxu2 %v232_v46  ;;  %v230_v48 = vld [vmem:[%s540_s5 + $0x28] sm:$0xff]  ;;  %v40_v49 = vld [vmem:[%s537_s2] sm:$0x7]  ;;  %v228_v2 = vld [vmem:[%s540_s5 + $0x18] sm:$0xff] }
  0x19   :  { %189 = vmatpush.msra.mxu0 %v145_v29  ;;  %v42_v50 = vperm.slane %v40_v49, 0  ;;  %v44_v54 = vperm.slane %v40_v49, 2  ;;  %v43_v56 = vperm.slane %v40_v49, 1  ;;  %v229_v1 = vld [vmem:[%s540_s5 + $0x20] sm:$0xff]  ;;  %v227_v3 = vld [vmem:[%s540_s5 + $0x10] sm:$0xff]  ;;  %v226_v4 = vld [vmem:[%s540_s5 + $0x8] sm:$0xff] }
  0x1a   :  { %171 = vmatpush.msra.mxu3 %v127_v30  ;;  %250 = vmatpush.msrb.mxu2 %v231_v47  ;;  %v225_v5 = vld [vmem:[%s540_s5] sm:$0xff]  ;;  %s315_s5 = smov [#allocation2]  }
  0x1b   :  { %190 = vmatpush.msra.mxu0 %v144_v31  ;;  %v285_v6 = vld [vmem:[%s539_s4] ss:$0 sm:$0xff]  ;;  %s268_s4 = sshll.u32 %s315_s5, 4  ;;  %s269_s4 = int_to_ptr.vmem [resolvable:$true] %s268_s4 }
  0x1c   :  { %172 = vmatpush.msra.mxu3 %v126_v32  ;;  %251 = vmatpush.msrb.mxu2 %v230_v48  ;;  %v286_v15 = vld [vmem:[%s541_s6] ss:$0 sm:$0xff] }
  0x1d   :  { %191 = vmatpush.msra.mxu0 %v143_v36 }
  0x1e   :  { %173 = vmatpush.msra.mxu3 %v125_v33  ;;  %252 = vmatpush.msrb.mxu2 %v229_v1 }
  0x1f   :  { %192 = vmatpush.msra.mxu0 %v142_v38 }
  0x20   :  { %174 = vmatpush.msra.mxu3 %v124_v34  ;;  %253 = vmatpush.msrb.mxu2 %v228_v2 }
  0x21   :  { %193 = vmatpush.msra.mxu0 %v141_v40 }
  0x22   :  { %175 = vmatpush.msra.mxu3 %v123_v35  ;;  %254 = vmatpush.msrb.mxu2 %v227_v3 }
  0x23   :  { %194 = vmatpush.msra.mxu0 %v140_v41 }
  0x24   :  { %176 = vmatpush.msra.mxu3 %v122_v37  ;;  %255 = vmatpush.msrb.mxu2 %v226_v4 }
  0x25   :  { %195 = vmatpush.msra.mxu0 %v139_v42 }
  0x26   :  { %177 = vmatpush.msra.mxu3 %v121_v39  ;;  %256 = vmatpush.msrb.mxu2 %v225_v5 }
  0x27   :  { %196 = vmatpush.msra.mxu0 %v138_v43 }
  0x29   :  { %197 = vmatpush.msra.mxu0 %v137_v45 }
  0x86   :  { %v69_v51 = vpop.f32.mrf.mxu1 }
  0x87   :  { %v70_v52 = vadd.f32 %v69_v51, %v42_v50 }
  0x89   :  { %vm112_vm1 = vcmp.gt.f32.partialorder %v70_v52, 0.0  ;;  %v115_v53 = vmul.f32 0.2, %v70_v52 }
  0x8b   :  { %v118_v55 = vsel %vm112_vm1, %v70_v52, %v115_v53 }
  0x8c   :  { %178 = vmatmul.f32.vlgmr.msra.gmra.mxu3 %v118_v55  ;;  %v109_v57 = vpop.f32.mrf.mxu2 }
  0x8d   :  { %v110_v58 = vadd.f32 %v109_v57, %v44_v54 }
  0x8e   :  { %v89_v59 = vpop.f32.mrf.mxu1 }
  0x8f   :  { %v90_v60 = vadd.f32 %v89_v59, %v43_v56  ;;  %vm114_vm2 = vcmp.gt.f32.partialorder %v110_v58, 0.0  ;;  %v117_v61 = vmul.f32 0.2, %v110_v58 }
  0x91   :  { %v120_v62 = vsel %vm114_vm2, %v110_v58, %v117_v61  ;;  %vm113_vm4 = vcmp.gt.f32.partialorder %v90_v60, 0.0  ;;  %v116_v63 = vmul.f32 0.2, %v90_v60 }
  0x92   :  { %282 = vmatmul.msk.f32.vlgmr.msra.gmra.mxu1 %vm158_vm3, %v120_v62 }
  0x93   :  { %v119_v0 = vsel %vm113_vm4, %v90_v60, %v116_v63 }
  0x94   :  { %198 = vmatmul.f32.vlgmr.msra.gmra.mxu0 %v119_v0 }
 0x10f   :  { %v179_v7 = vpop.f32.mrf.mxu3  ;;  %v219_v11 = vpop.f32.mrf.mxu1 }
 0x110   :  { %v180_v8 = vadd.f32 %v285_v6, %v179_v7 }
 0x111   :  { %v199_v9 = vpop.f32.mrf.mxu0 }
 0x112   :  { %v200_v10 = vadd.f32 %v199_v9, %v180_v8 }
 0x114   :  { %v220_v12 = vadd.f32 %v219_v11, %v200_v10 }
 0x116   :  { %vm222_vm5 = vcmp.gt.f32.partialorder %v220_v12, 0.0  ;;  %v223_v13 = vmul.f32 0.2, %v220_v12 }
 0x118   :  { %v224_v14 = vsel %vm222_vm5, %v220_v12, %v223_v13 }
 0x119   :  { %283 = vmatmul.msk.f32.vlgmr.msrb.gmra.mxu2 %vm237_vm6, %v224_v14 }
 0x19c   :  { %v258_v16 = vpop.f32.mrf.mxu2 }
 0x19d   :  { %v259_v17 = vadd.f32 %v286_v15, %v258_v16 }
 0x19f   :  { %287 = vtanh.f32 %v259_v17 }
 0x1a5   :  { %v288_v18 = vpop.eup %287 }
 0x1a6   :  { %262 = vst.msk [vmem:[#allocation2] sm:$0xff] %vm158_vm3, %v288_v18 }
 0x1a7   :  { %273 = dma.vmem_to_hbm [thread:$0]  %s269_s4, 128, %s271_s16, [#allocation3]  }
 0x1a8   :  { %313 = dma.done.wait [#allocation3], 128  }
 0x1a9   :  { %314 = vsyncadd [#allocation3], 4294967168 }
 0x1aa   :  { %278 = vsyncpa [#allocation3], 1 }

</bundles_post_ra>
